<compile_context>
chip_gen: v7x
topology: tpu7x:2x2x1
jax: 0.10.0
libtpu: 0.0.40
codegen_flags: <defaults>
</compile_context>

<pallas_src>
import functools

import jax
import jax.numpy as jnp
from jax import lax
from jax.experimental import pallas as pl
from jax.experimental.pallas import tpu as pltpu

LANE = 128          # lane-dense padded width for all kernel outputs
NEG_BIG = -1e30     # padded-class logit filler (vanishes under log-softmax)


# ---------------------------------------------------------------------------
# Pallas kernels
# ---------------------------------------------------------------------------
def _gemm_bias_relu_kernel(x_ref, w_ref, b_ref, o_ref):
    # o = relu(x @ W + b); f32 accumulation on the MXU.
    y = jnp.dot(x_ref[...], w_ref[...], preferred_element_type=jnp.float32)
    o_ref[...] = jnp.maximum(y + b_ref[...], 0.0).astype(o_ref.dtype)


def _head_kernel(x_ref, w1_ref, b1_ref, w2_ref, b2_ref, w3_ref, b3_ref,
                 o1_ref, o2_ref):
    x = x_ref[...]
    h = jnp.dot(x, w1_ref[...], preferred_element_type=jnp.float32) + b1_ref[...]
    h = jnp.maximum(h, 0.0)
    # nn.Dropout(): identity at inference time.
    # TODO(synk): training-mode dropout (p=0.5) would need pltpu.prng_seed /
    # pltpu.prng_random_bits masking and 1/(1-p) scaling.
    a = jnp.dot(h, w2_ref[...], preferred_element_type=jnp.float32) + b2_ref[...]
    a = jnp.maximum(a, 0.0)
    o1_ref[...] = a.astype(o1_ref.dtype)                 # out1 = relu(fc2(.))
    y = jnp.dot(a, w3_ref[...], preferred_element_type=jnp.float32) + b3_ref[...]
    # numerically-stable log-softmax over the (lane-padded) class axis;
    # padded columns carry a -1e30 bias and contribute exp(.) = 0.
    m = jnp.max(y, axis=-1, keepdims=True)
    s = y - m
    lse = jnp.log(jnp.sum(jnp.exp(s), axis=-1, keepdims=True))
    o2_ref[...] = (s - lse).astype(o2_ref.dtype)


# ---------------------------------------------------------------------------
# pallas_call wrappers
# ---------------------------------------------------------------------------
def _pick_block(m, candidates=(512, 256, 128, 64, 32, 16, 8)):
    for c in candidates:
        if m % c == 0:
            return c
    return m


def _gemm_bias_relu(x, w, b):
    m, k = x.shape
    kw, n = w.shape
    assert k == kw and n % LANE == 0
    bm = _pick_block(m)
    return pl.pallas_call(
        _gemm_bias_relu_kernel,
        out_shape=jax.ShapeDtypeStruct((m, n), jnp.float32),
        grid=(m // bm,),
        in_specs=[
            pl.BlockSpec((bm, k), lambda i: (i, 0)),
            pl.BlockSpec((k, n), lambda i: (0, 0)),    # weights stay VMEM-resident
            pl.BlockSpec((1, n), lambda i: (0, 0)),
        ],
        out_specs=pl.BlockSpec((bm, n), lambda i: (i, 0)),
        compiler_params=pltpu.CompilerParams(
            dimension_semantics=("parallel",)),
        cost_estimate=pl.CostEstimate(
            flops=2 * m * k * n, transcendentals=0,
            bytes_accessed=4 * (m * k + k * n + n + m * n)),
    )(x, w, b)


def _mlp_head(x, w1, b1, w2, b2, w3, b3):
    batch, din = x.shape
    bb = _pick_block(batch)
    flops = 2 * batch * (din * LANE + LANE * LANE + LANE * LANE)
    bytes_accessed = 4 * (batch * din + din * LANE + 2 * LANE * LANE
                          + 3 * LANE + 2 * batch * LANE)
    return pl.pallas_call(
        _head_kernel,
        out_shape=(jax.ShapeDtypeStruct((batch, LANE), jnp.float32),
                   jax.ShapeDtypeStruct((batch, LANE), jnp.float32)),
        grid=(batch // bb,),
        in_specs=[
            pl.BlockSpec((bb, din), lambda i: (i, 0)),
            pl.BlockSpec((din, LANE), lambda i: (0, 0)),
            pl.BlockSpec((1, LANE), lambda i: (0, 0)),
            pl.BlockSpec((LANE, LANE), lambda i: (0, 0)),
            pl.BlockSpec((1, LANE), lambda i: (0, 0)),
            pl.BlockSpec((LANE, LANE), lambda i: (0, 0)),
            pl.BlockSpec((1, LANE), lambda i: (0, 0)),
        ],
        out_specs=(pl.BlockSpec((bb, LANE), lambda i: (i, 0)),
                   pl.BlockSpec((bb, LANE), lambda i: (i, 0))),
        compiler_params=pltpu.CompilerParams(
            dimension_semantics=("parallel",)),
        cost_estimate=pl.CostEstimate(
            flops=flops, transcendentals=batch * LANE,
            bytes_accessed=bytes_accessed),
    )(x, w1, b1, w2, b2, w3, b3)


# ---------------------------------------------------------------------------
# JAX glue (pure data movement) and one-time parameter prep
# ---------------------------------------------------------------------------
def _extract_patches(x, ksize):
    """x: [B, H, W, C] -> patches [B*OH*OW, ksize*ksize*C] (k-major, c-minor)."""
    b, h, w, c = x.shape
    oh, ow = h - ksize + 1, w - ksize + 1
    cols = [x[:, di:di + oh, dj:dj + ow, :]
            for di in range(ksize) for dj in range(ksize)]
    p = jnp.stack(cols, axis=3)                        # [B, OH, OW, k*k, C]
    return p.reshape(b * oh * ow, ksize * ksize * c), (b, oh, ow)


def _maxpool2(x):
    b, h, w, c = x.shape
    return jnp.max(x.reshape(b, h // 2, 2, w // 2, 2, c), axis=(2, 4))


def _pad2(a, rows, cols, fill=0.0):
    r, c = a.shape
    return jnp.pad(a, ((0, rows - r), (0, cols - c)), constant_values=fill)


def prepare_params(p):
    """One-time conversion of PyTorch-layout params into padded GEMM-ready
    arrays (kept out of the per-call hot path)."""
    def conv_w(w):                                      # [Cout,Cin,kh,kw] -> [(kh*kw*Cin), 128]
        cout, cin, kh, kw = w.shape
        wm = jnp.transpose(w, (2, 3, 1, 0)).reshape(kh * kw * cin, cout)
        return _pad2(wm, kh * kw * cin, LANE)

    def vec(b, fill=0.0):
        return jnp.pad(b, (0, LANE - b.shape[0]),
                       constant_values=fill).reshape(1, LANE)

    # fc1 columns are in PyTorch's (c, h, w) flatten order; permute once to the
    # (h, w, c) order produced by this pipeline's NHWC flatten.
    fc1_w = p["fc1_w"].reshape(84, 12, 4, 4).transpose(0, 2, 3, 1).reshape(84, 192)

    return {
        "c1_w": conv_w(p["conv1_w"]), "c1_b": vec(p["conv1_b"]),
        "c2_w": conv_w(p["conv2_w"]), "c2_b": vec(p["conv2_b"]),
        "f1_w": _pad2(fc1_w.T, 192, LANE), "f1_b": vec(p["fc1_b"]),
        "f2_w": _pad2(p["fc2_w"].T, LANE, LANE), "f2_b": vec(p["fc2_b"]),
        "f3_w": _pad2(p["fc3_w"].T, LANE, LANE),
        "f3_b": vec(p["fc3_b"], fill=NEG_BIG),          # padded classes vanish
    }


@functools.partial(jax.jit, static_argnames=("num_classes",))
def cnn_fashion_forward(x_nchw, prep, *, num_classes):
    b = x_nchw.shape[0]
    x = jnp.transpose(x_nchw, (0, 2, 3, 1))             # NHWC (C=1: trivial)

    # conv1 (5x5, 1->6) + ReLU as an im2col GEMM, then 2x2 max-pool.
    p1, (_, oh1, ow1) = _extract_patches(x, 5)           # [B*24*24, 25]
    h1 = _gemm_bias_relu(p1, prep["c1_w"], prep["c1_b"])  # [B*24*24, 128]
    h1 = _maxpool2(h1[:, :6].reshape(b, oh1, ow1, 6))     # [B, 12, 12, 6]

    # conv2 (5x5, 6->12) + ReLU, then 2x2 max-pool.  (conv2_drop is unused in
    # the PyTorch forward; Dropout2d would be identity at eval anyway.)
    p2, (_, oh2, ow2) = _extract_patches(h1, 5)           # [B*8*8, 150]
    h2 = _gemm_bias_relu(p2, prep["c2_w"], prep["c2_b"])  # [B*8*8, 128]
    h2 = _maxpool2(h2[:, :12].reshape(b, oh2, ow2, 12))   # [B, 4, 4, 12]

    flat = h2.reshape(b, 12 * 4 * 4)                      # (h, w, c) flatten

    out1p, out2p = _mlp_head(flat, prep["f1_w"], prep["f1_b"],
                             prep["f2_w"], prep["f2_b"],
                             prep["f3_w"], prep["f3_b"])
    return out1p[:, :42], out2p[:, :num_classes]


# ---------------------------------------------------------------------------
# Pure-JAX reference mirroring the PyTorch module (eval mode)
# ---------------------------------------------------------------------------
def torch_reference(x, p):
    def conv(z, w, b):
        z = lax.conv_general_dilated(z, w, (1, 1), "VALID",
                                     dimension_numbers=("NCHW", "OIHW", "NCHW"))
        return z + b[None, :, None, None]

    def pool(z):
        return lax.reduce_window(z, -jnp.inf, lax.max,
                                 (1, 1, 2, 2), (1, 1, 2, 2), "VALID")

    h = pool(jax.nn.relu(conv(x, p["conv1_w"], p["conv1_b"])))
    h = pool(jax.nn.relu(conv(h, p["conv2_w"], p["conv2_b"])))
    h = h.reshape(h.shape[0], -1)                         # (c, h, w) flatten
    h = jax.nn.relu(h @ p["fc1_w"].T + p["fc1_b"])
    out1 = jax.nn.relu(h @ p["fc2_w"].T + p["fc2_b"])
    out2 = jax.nn.log_softmax(out1 @ p["fc3_w"].T + p["fc3_b"], axis=-1)
    return out1, out2


def _init_linear(key, fan_in, shape):
    kw, kb = jax.random.split(key)
    bound = 1.0 / jnp.sqrt(jnp.float32(fan_in))
    w = jax.random.uniform(kw, shape, jnp.float32, -bound, bound)
    b = jax.random.uniform(kb, (shape[0],), jnp.float32, -bound, bound)
    return w, b


if __name__ == "__main__":
    batch, num_classes = 2, 10

    key = jax.random.PRNGKey(0)
    kx, k1, k2, k3, k4, k5 = jax.random.split(key, 6)

    x = jax.random.normal(kx, (batch, 1, 28, 28), jnp.float32)

    conv1_w, conv1_b = _init_linear(k1, 1 * 5 * 5, (6, 1, 5, 5))
    conv2_w, conv2_b = _init_linear(k2, 6 * 5 * 5, (12, 6, 5, 5))
    fc1_w, fc1_b = _init_linear(k3, 192, (84, 192))
    fc2_w, fc2_b = _init_linear(k4, 84, (42, 84))
    fc3_w, fc3_b = _init_linear(k5, 42, (num_classes, 42))

    params = dict(conv1_w=conv1_w, conv1_b=conv1_b,
                  conv2_w=conv2_w, conv2_b=conv2_b,
                  fc1_w=fc1_w, fc1_b=fc1_b,
                  fc2_w=fc2_w, fc2_b=fc2_b,
                  fc3_w=fc3_w, fc3_b=fc3_b)

    prep = prepare_params(params)          # one-time, outside the hot path

    out1, out2 = cnn_fashion_forward(x, prep, num_classes=num_classes)
    out1, out2 = jax.block_until_ready((out1, out2))

    ref1, ref2 = torch_reference(x, params)

    assert out1.shape == (batch, 42) and out2.shape == (batch, num_classes)
    assert jnp.allclose(out1, ref1, atol=1e-4, rtol=1e-4)
    assert jnp.allclose(out2, ref2, atol=1e-4, rtol=1e-4)

    print("KERNEL_OK")
</pallas_src>

<mosaic_0001>
module attributes {stable_mosaic.version = 11 : i64} {
  func.func @_gemm_bias_relu_kernel(%arg0: i32, %arg1: memref<128x25xf32, #tpu.memory_space<vmem>>, %arg2: memref<25x128xf32, #tpu.memory_space<vmem>>, %arg3: memref<1x128xf32, #tpu.memory_space<vmem>>, %arg4: memref<128x128xf32, #tpu.memory_space<vmem>>) attributes {dimension_semantics = [#tpu.dimension_semantics<parallel>], iteration_bounds = array<i64: 9>, scalar_prefetch = 0 : i64, scratch_operands = 0 : i64, tpu.core_type = #tpu.core_type<tc>, window_params = [{transform_indices = @transform_0, window_bounds = array<i64: 128, 25>}, {pipeline_mode = #tpu.pipeline_mode<synchronous>, transform_indices = @transform_1, window_bounds = array<i64: 25, 128>}, {pipeline_mode = #tpu.pipeline_mode<synchronous>, transform_indices = @transform_2, window_bounds = array<i64: 1, 128>}, {transform_indices = @transform_3, window_bounds = array<i64: 128, 128>}]} {
    %c0 = arith.constant 0 : index
    %c0_0 = arith.constant 0 : index
    %0 = vector.load %arg1[%c0, %c0_0] : memref<128x25xf32, #tpu.memory_space<vmem>>, vector<128x25xf32>
    %c0_1 = arith.constant 0 : index
    %c0_2 = arith.constant 0 : index
    %1 = vector.load %arg2[%c0_1, %c0_2] : memref<25x128xf32, #tpu.memory_space<vmem>>, vector<25x128xf32>
    %cst = arith.constant dense<0.000000e+00> : vector<128x128xf32>
    %2 = tpu.matmul %0, %1, %cst {dimension_numbers = #tpu.dot_dimension_numbers<[1], [0], [0], [1], [0, 0, 1, 1], [], []>} : vector<128x25xf32>, vector<25x128xf32>, vector<128x128xf32> -> vector<128x128xf32>
    %c0_3 = arith.constant 0 : index
    %c0_4 = arith.constant 0 : index
    %3 = vector.load %arg3[%c0_3, %c0_4] : memref<1x128xf32, #tpu.memory_space<vmem>>, vector<1x128xf32>
    %4 = vector.broadcast %3 : vector<1x128xf32> to vector<128x128xf32>
    %5 = arith.addf %2, %4 : vector<128x128xf32>
    %cst_5 = arith.constant 0.000000e+00 : f32
    %6 = vector.broadcast %cst_5 : f32 to vector<128x128xf32>
    %7 = arith.maximumf %5, %6 : vector<128x128xf32>
    %c0_6 = arith.constant 0 : index
    %c0_7 = arith.constant 0 : index
    %8 = vector.load %arg4[%c0_6, %c0_7] : memref<128x128xf32, #tpu.memory_space<vmem>>, vector<128x128xf32>
    tpu.vector_store %arg4[%c0_6, %c0_7], %7 {strides = array<i32>} : memref<128x128xf32, #tpu.memory_space<vmem>>, vector<128x128xf32>,
    return
  }
  func.func @transform_0(%arg0: i32) -> (i32, i32) {
    %c0_i32 = arith.constant 0 : i32
    %c0_i32_0 = arith.constant 0 : i32
    return %arg0, %c0_i32 : i32, i32
  }
  func.func @transform_1(%arg0: i32) -> (i32, i32) {
    %c0_i32 = arith.constant 0 : i32
    %c0_i32_0 = arith.constant 0 : i32
    %c0_i32_1 = arith.constant 0 : i32
    return %c0_i32, %c0_i32_0 : i32, i32
  }
  func.func @transform_2(%arg0: i32) -> (i32, i32) {
    %c0_i32 = arith.constant 0 : i32
    %c0_i32_0 = arith.constant 0 : i32
    %c0_i32_1 = arith.constant 0 : i32
    return %c0_i32, %c0_i32_0 : i32, i32
  }
  func.func @transform_3(%arg0: i32) -> (i32, i32) {
    %c0_i32 = arith.constant 0 : i32
    %c0_i32_0 = arith.constant 0 : i32
    return %arg0, %c0_i32 : i32, i32
  }
}

module attributes {stable_mosaic.version = 11 : i64} {
  func.func @_gemm_bias_relu_kernel(%arg0: i32, %arg1: memref<128x150xf32, #tpu.memory_space<vmem>>, %arg2: memref<150x128xf32, #tpu.memory_space<vmem>>, %arg3: memref<1x128xf32, #tpu.memory_space<vmem>>, %arg4: memref<128x128xf32, #tpu.memory_space<vmem>>) attributes {dimension_semantics = [#tpu.dimension_semantics<parallel>], iteration_bounds = array<i64: 1>, scalar_prefetch = 0 : i64, scratch_operands = 0 : i64, tpu.core_type = #tpu.core_type<tc>, window_params = [{transform_indices = @transform_0, window_bounds = array<i64: 128, 150>}, {pipeline_mode = #tpu.pipeline_mode<synchronous>, transform_indices = @transform_1, window_bounds = array<i64: 150, 128>}, {pipeline_mode = #tpu.pipeline_mode<synchronous>, transform_indices = @transform_2, window_bounds = array<i64: 1, 128>}, {transform_indices = @transform_3, window_bounds = array<i64: 128, 128>}]} {
    %c0 = arith.constant 0 : index
    %c0_0 = arith.constant 0 : index
    %0 = vector.load %arg1[%c0, %c0_0] : memref<128x150xf32, #tpu.memory_space<vmem>>, vector<128x150xf32>
    %c0_1 = arith.constant 0 : index
    %c0_2 = arith.constant 0 : index
    %1 = vector.load %arg2[%c0_1, %c0_2] : memref<150x128xf32, #tpu.memory_space<vmem>>, vector<150x128xf32>
    %cst = arith.constant dense<0.000000e+00> : vector<128x128xf32>
    %2 = tpu.matmul %0, %1, %cst {dimension_numbers = #tpu.dot_dimension_numbers<[1], [0], [0], [1], [0, 0, 1, 1], [], []>} : vector<128x150xf32>, vector<150x128xf32>, vector<128x128xf32> -> vector<128x128xf32>
    %c0_3 = arith.constant 0 : index
    %c0_4 = arith.constant 0 : index
    %3 = vector.load %arg3[%c0_3, %c0_4] : memref<1x128xf32, #tpu.memory_space<vmem>>, vector<1x128xf32>
    %4 = vector.broadcast %3 : vector<1x128xf32> to vector<128x128xf32>
    %5 = arith.addf %2, %4 : vector<128x128xf32>
    %cst_5 = arith.constant 0.000000e+00 : f32
    %6 = vector.broadcast %cst_5 : f32 to vector<128x128xf32>
    %7 = arith.maximumf %5, %6 : vector<128x128xf32>
    %c0_6 = arith.constant 0 : index
    %c0_7 = arith.constant 0 : index
    %8 = vector.load %arg4[%c0_6, %c0_7] : memref<128x128xf32, #tpu.memory_space<vmem>>, vector<128x128xf32>
    tpu.vector_store %arg4[%c0_6, %c0_7], %7 {strides = array<i32>} : memref<128x128xf32, #tpu.memory_space<vmem>>, vector<128x128xf32>,
    return
  }
  func.func @transform_0(%arg0: i32) -> (i32, i32) {
    %c0_i32 = arith.constant 0 : i32
    %c0_i32_0 = arith.constant 0 : i32
    return %arg0, %c0_i32 : i32, i32
  }
  func.func @transform_1(%arg0: i32) -> (i32, i32) {
    %c0_i32 = arith.constant 0 : i32
    %c0_i32_0 = arith.constant 0 : i32
    %c0_i32_1 = arith.constant 0 : i32
    return %c0_i32, %c0_i32_0 : i32, i32
  }
  func.func @transform_2(%arg0: i32) -> (i32, i32) {
    %c0_i32 = arith.constant 0 : i32
    %c0_i32_0 = arith.constant 0 : i32
    %c0_i32_1 = arith.constant 0 : i32
    return %c0_i32, %c0_i32_0 : i32, i32
  }
  func.func @transform_3(%arg0: i32) -> (i32, i32) {
    %c0_i32 = arith.constant 0 : i32
    %c0_i32_0 = arith.constant 0 : i32
    return %arg0, %c0_i32 : i32, i32
  }
}

module attributes {stable_mosaic.version = 11 : i64} {
  func.func @_head_kernel(%arg0: i32, %arg1: memref<2x192xf32, #tpu.memory_space<vmem>>, %arg2: memref<192x128xf32, #tpu.memory_space<vmem>>, %arg3: memref<1x128xf32, #tpu.memory_space<vmem>>, %arg4: memref<128x128xf32, #tpu.memory_space<vmem>>, %arg5: memref<1x128xf32, #tpu.memory_space<vmem>>, %arg6: memref<128x128xf32, #tpu.memory_space<vmem>>, %arg7: memref<1x128xf32, #tpu.memory_space<vmem>>, %arg8: memref<2x128xf32, #tpu.memory_space<vmem>>, %arg9: memref<2x128xf32, #tpu.memory_space<vmem>>) attributes {dimension_semantics = [#tpu.dimension_semantics<parallel>], iteration_bounds = array<i64: 1>, scalar_prefetch = 0 : i64, scratch_operands = 0 : i64, tpu.core_type = #tpu.core_type<tc>, window_params = [{transform_indices = @transform_0, window_bounds = array<i64: 2, 192>}, {pipeline_mode = #tpu.pipeline_mode<synchronous>, transform_indices = @transform_1, window_bounds = array<i64: 192, 128>}, {pipeline_mode = #tpu.pipeline_mode<synchronous>, transform_indices = @transform_2, window_bounds = array<i64: 1, 128>}, {pipeline_mode = #tpu.pipeline_mode<synchronous>, transform_indices = @transform_3, window_bounds = array<i64: 128, 128>}, {pipeline_mode = #tpu.pipeline_mode<synchronous>, transform_indices = @transform_4, window_bounds = array<i64: 1, 128>}, {pipeline_mode = #tpu.pipeline_mode<synchronous>, transform_indices = @transform_5, window_bounds = array<i64: 128, 128>}, {pipeline_mode = #tpu.pipeline_mode<synchronous>, transform_indices = @transform_6, window_bounds = array<i64: 1, 128>}, {transform_indices = @transform_7, window_bounds = array<i64: 2, 128>}, {transform_indices = @transform_8, window_bounds = array<i64: 2, 128>}]} {
    %c0 = arith.constant 0 : index
    %c0_0 = arith.constant 0 : index
    %0 = vector.load %arg1[%c0, %c0_0] : memref<2x192xf32, #tpu.memory_space<vmem>>, vector<2x192xf32>
    %c0_1 = arith.constant 0 : index
    %c0_2 = arith.constant 0 : index
    %1 = vector.load %arg2[%c0_1, %c0_2] : memref<192x128xf32, #tpu.memory_space<vmem>>, vector<192x128xf32>
    %cst = arith.constant dense<0.000000e+00> : vector<2x128xf32>
    %2 = tpu.matmul %0, %1, %cst {dimension_numbers = #tpu.dot_dimension_numbers<[1], [0], [0], [1], [0, 0, 1, 1], [], []>} : vector<2x192xf32>, vector<192x128xf32>, vector<2x128xf32> -> vector<2x128xf32>
    %c0_3 = arith.constant 0 : index
    %c0_4 = arith.constant 0 : index
    %3 = vector.load %arg3[%c0_3, %c0_4] : memref<1x128xf32, #tpu.memory_space<vmem>>, vector<1x128xf32>
    %4 = vector.broadcast %3 : vector<1x128xf32> to vector<2x128xf32>
    %5 = arith.addf %2, %4 : vector<2x128xf32>
    %cst_5 = arith.constant 0.000000e+00 : f32
    %6 = vector.broadcast %cst_5 : f32 to vector<2x128xf32>
    %7 = arith.maximumf %5, %6 : vector<2x128xf32>
    %c0_6 = arith.constant 0 : index
    %c0_7 = arith.constant 0 : index
    %8 = vector.load %arg4[%c0_6, %c0_7] : memref<128x128xf32, #tpu.memory_space<vmem>>, vector<128x128xf32>
    %cst_8 = arith.constant dense<0.000000e+00> : vector<2x128xf32>
    %9 = tpu.matmul %7, %8, %cst_8 {dimension_numbers = #tpu.dot_dimension_numbers<[1], [0], [0], [1], [0, 0, 1, 1], [], []>} : vector<2x128xf32>, vector<128x128xf32>, vector<2x128xf32> -> vector<2x128xf32>
    %c0_9 = arith.constant 0 : index
    %c0_10 = arith.constant 0 : index
    %10 = vector.load %arg5[%c0_9, %c0_10] : memref<1x128xf32, #tpu.memory_space<vmem>>, vector<1x128xf32>
    %11 = vector.broadcast %10 : vector<1x128xf32> to vector<2x128xf32>
    %12 = arith.addf %9, %11 : vector<2x128xf32>
    %cst_11 = arith.constant 0.000000e+00 : f32
    %13 = vector.broadcast %cst_11 : f32 to vector<2x128xf32>
    %14 = arith.maximumf %12, %13 : vector<2x128xf32>
    %c0_12 = arith.constant 0 : index
    %c0_13 = arith.constant 0 : index
    %15 = vector.load %arg8[%c0_12, %c0_13] : memref<2x128xf32, #tpu.memory_space<vmem>>, vector<2x128xf32>
    tpu.vector_store %arg8[%c0_12, %c0_13], %14 {strides = array<i32>} : memref<2x128xf32, #tpu.memory_space<vmem>>, vector<2x128xf32>,
    %c0_14 = arith.constant 0 : index
    %c0_15 = arith.constant 0 : index
    %16 = vector.load %arg6[%c0_14, %c0_15] : memref<128x128xf32, #tpu.memory_space<vmem>>, vector<128x128xf32>
    %cst_16 = arith.constant dense<0.000000e+00> : vector<2x128xf32>
    %17 = tpu.matmul %14, %16, %cst_16 {dimension_numbers = #tpu.dot_dimension_numbers<[1], [0], [0], [1], [0, 0, 1, 1], [], []>} : vector<2x128xf32>, vector<128x128xf32>, vector<2x128xf32> -> vector<2x128xf32>
    %c0_17 = arith.constant 0 : index
    %c0_18 = arith.constant 0 : index
    %18 = vector.load %arg7[%c0_17, %c0_18] : memref<1x128xf32, #tpu.memory_space<vmem>>, vector<1x128xf32>
    %19 = vector.broadcast %18 : vector<1x128xf32> to vector<2x128xf32>
    %20 = arith.addf %17, %19 : vector<2x128xf32>
    %cst_19 = arith.constant dense<0xFF800000> : vector<2xf32>
    %21 = vector.multi_reduction <maximumf>, %20, %cst_19 [1] : vector<2x128xf32> to vector<2xf32>
    %22 = vector.shape_cast %21 : vector<2xf32> to vector<2x1xf32>
    %23 = vector.broadcast %22 : vector<2x1xf32> to vector<2x128xf32>
    %24 = arith.subf %20, %23 : vector<2x128xf32>
    %25 = math.exp %24 : vector<2x128xf32>
    %cst_20 = arith.constant dense<0.000000e+00> : vector<2xf32>
    %26 = vector.multi_reduction <add>, %25, %cst_20 [1] : vector<2x128xf32> to vector<2xf32>
    %27 = vector.shape_cast %26 : vector<2xf32> to vector<2x1xf32>
    %28 = math.log %27 : vector<2x1xf32>
    %29 = vector.broadcast %28 : vector<2x1xf32> to vector<2x128xf32>
    %30 = arith.subf %24, %29 : vector<2x128xf32>
    %c0_21 = arith.constant 0 : index
    %c0_22 = arith.constant 0 : index
    %31 = vector.load %arg9[%c0_21, %c0_22] : memref<2x128xf32, #tpu.memory_space<vmem>>, vector<2x128xf32>
    tpu.vector_store %arg9[%c0_21, %c0_22], %30 {strides = array<i32>} : memref<2x128xf32, #tpu.memory_space<vmem>>, vector<2x128xf32>,
    return
  }
  func.func @transform_0(%arg0: i32) -> (i32, i32) {
    %c0_i32 = arith.constant 0 : i32
    %c0_i32_0 = arith.constant 0 : i32
    return %arg0, %c0_i32 : i32, i32
  }
  func.func @transform_1(%arg0: i32) -> (i32, i32) {
    %c0_i32 = arith.constant 0 : i32
    %c0_i32_0 = arith.constant 0 : i32
    %c0_i32_1 = arith.constant 0 : i32
    return %c0_i32, %c0_i32_0 : i32, i32
  }
  func.func @transform_2(%arg0: i32) -> (i32, i32) {
    %c0_i32 = arith.constant 0 : i32
    %c0_i32_0 = arith.constant 0 : i32
    %c0_i32_1 = arith.constant 0 : i32
    return %c0_i32, %c0_i32_0 : i32, i32
  }
  func.func @transform_3(%arg0: i32) -> (i32, i32) {
    %c0_i32 = arith.constant 0 : i32
    %c0_i32_0 = arith.constant 0 : i32
    %c0_i32_1 = arith.constant 0 : i32
    return %c0_i32, %c0_i32_0 : i32, i32
  }
  func.func @transform_4(%arg0: i32) -> (i32, i32) {
    %c0_i32 = arith.constant 0 : i32
    %c0_i32_0 = arith.constant 0 : i32
    %c0_i32_1 = arith.constant 0 : i32
    return %c0_i32, %c0_i32_0 : i32, i32
  }
  func.func @transform_5(%arg0: i32) -> (i32, i32) {
    %c0_i32 = arith.constant 0 : i32
    %c0_i32_0 = arith.constant 0 : i32
    %c0_i32_1 = arith.constant 0 : i32
    return %c0_i32, %c0_i32_0 : i32, i32
  }
  func.func @transform_6(%arg0: i32) -> (i32, i32) {
    %c0_i32 = arith.constant 0 : i32
    %c0_i32_0 = arith.constant 0 : i32
    %c0_i32_1 = arith.constant 0 : i32
    return %c0_i32, %c0_i32_0 : i32, i32
  }
  func.func @transform_7(%arg0: i32) -> (i32, i32) {
    %c0_i32 = arith.constant 0 : i32
    %c0_i32_0 = arith.constant 0 : i32
    return %arg0, %c0_i32 : i32, i32
  }
  func.func @transform_8(%arg0: i32) -> (i32, i32) {
    %c0_i32 = arith.constant 0 : i32
    %c0_i32_0 = arith.constant 0 : i32
    return %arg0, %c0_i32 : i32, i32
  }
}

</mosaic_0001>

<bundles_post_ra>
// kernel: cnn_fashion_forward.3
= control target key start
LH: loop header
LB: loop body
LE: loop exit
PB: predicated region body
PF: predicated region fallthrough
CT: control target
= control target key end

     0   :  { %s620_s12 = smov 0   ;;  %s711_s0 = inlined_call_operand.vmem [shape: f32[1152,25], index: 0, kind: input, shape index: {}]   ;;  %s712_s1 = inlined_call_operand.vmem [shape: f32[25,128], index: 1, kind: input, shape index: {}]   ;;  %s713_s2 = inlined_call_operand.vmem [shape: f32[1,128], index: 2, kind: input, shape index: {}]   ;;  %s714_s3 = inlined_call_operand.vmem [shape: f32[1152,128], index: 3, kind: output, shape index: {}]  }
   0x1 LB: > { %s487_s13 = sadd.s32 4294967295, %s597_s12   ;;  %p491_p0 = scmp.ge.s32.totalorder %s597_s12, 1  ;;  %s597_s12 = sphi %s620_s12, %s13_s12  }
   0x2   : > { %p138_p1 = scmp.lt.s32.totalorder %s597_s12, 10 }
   0x4   : > { %p139_p2 = pnand %p491_p0, %p138_p1 }
   0x5   : > { %v190_v0 = vld [vmem:[%s712_s1] sm:$0xff] (!%p139_p2)  ;;  %v191_v1 = vld [vmem:[%s712_s1 + $0x8] sm:$0xff] (!%p139_p2)  ;;  %v192_v2 = vld [vmem:[%s712_s1 + $0x10] sm:$0xff] (!%p139_p2)  ;;  %vm250_vm0 = vcmask (!%p139_p2), 1040384   ;;  %s492_s20 = sshll.u32 (!%p139_p2), %s487_s13, 4  ;;  %vm599_vm1 = vmmov (!%p139_p2), 1  }
   0x6   : > { %142 = sbr.rel (%p139_p2) target bundleno = 249 (0xf9), region = 32  ;;  %v568_v3 = vpack.c.bf16 (!%p139_p2), %v191_v1, %v190_v0  ;;  %v193_v4 = vld [vmem:[%s712_s1 + $0x18] sm:$0x1] (!%p139_p2)  ;;  %p163_p3 = scmp.lt.s32.totalorder (!%p139_p2), %s492_s20, 143  ;;  %vm573_vm2 = vmpackc.low (!%p139_p2), %vm250_vm0, %vm599_vm1  ;;  %vm201_vm3 = vcmask (!%p139_p2), 203776  }
   0x7   : > { %v572_v5 = vpack.c.bf16 (!%p139_p2), %v193_v4, %v192_v2  ;;  %v496_v22 = vld [vmem:[%s713_s2] ss:$0 sm:$0xff] (!%p139_p2) }
   0x8   : > { %569 = vmatprep.subr.bf16.mxu0 (!%p139_p2), %v568_v3  ;;  %578 = vmatprep.subr.bf16.mxu1 (!%p139_p2), %v568_v3 }
   0x9   : > { %571 = vmatpush3.bf16.msra.mxu0 (!%p139_p2), %v568_v3  ;;  %580 = vmatpush3.bf16.msra.mxu1 (!%p139_p2), %v568_v3 }
   0xa   : > { %574 = vmatprep.subr.msk.bf16.mxu0 (!%p139_p2), %vm573_vm2, %v572_v5  ;;  %579 = vmatprep.subr.msk.bf16.mxu1 (!%p139_p2), %vm573_vm2, %v572_v5 }
   0xd   : > { %s716_s20 = smov (!%p163_p3, %s492_s20), 143  ;;  %577 = vmatpush3.bf16.msk.msra.mxu0 %vm573_vm2, %v572_v5  ;;  %581 = vmatpush3.bf16.msk.msra.mxu1 %vm573_vm2, %v572_v5 }
   0xe   : > { %s493_s23 = sshll.u32 %s716_s20, 3 }
   0xf   : > { %s648_s26 = scalar_lea.vmem %s711_s0, %s493_s23  ;;  %s690_s4 = scalar_lea.vmem %s714_s3, %s493_s23 }
  0x10   : > { %v174_v6 = vld [vmem:[%s648_s26] sm:$0xff]  ;;  %v175_v8 = vld [vmem:[%s648_s26 + $0x8] sm:$0xff]  ;;  %v176_v10 = vld [vmem:[%s648_s26 + $0x10] sm:$0xff] }
  0x11   : > { %v182_v7 = vld [vmem:[%s648_s26 + $0x40] sm:$0xff]  ;;  %v183_v9 = vld [vmem:[%s648_s26 + $0x48] sm:$0xff]  ;;  %544 = vmatprep.mubr.msk.f32.mxu0 %vm201_vm3, %v174_v6  ;;  %v184_v11 = vld [vmem:[%s648_s26 + $0x50] sm:$0xff] }
  0x12   : > { %556 = vmatprep.mubr.msk.f32.mxu1 %vm201_vm3, %v182_v7  ;;  %545 = vmatmul.mubr.msk.f32.vlgmr.msra.gmra.mrb[0].mxu0 %vm201_vm3, %v175_v8  ;;  %v177_v12 = vld [vmem:[%s648_s26 + $0x18] sm:$0xff]  ;;  %v178_v14 = vld [vmem:[%s648_s26 + $0x20] sm:$0xff]  ;;  %v179_v16 = vld [vmem:[%s648_s26 + $0x28] sm:$0xff] }
  0x13   : > { %557 = vmatmul.mubr.msk.f32.vlgmr.msra.gmra.mrb[0].mxu1 %vm201_vm3, %v183_v9  ;;  %547 = vmatprep.mubr.msk.f32.mxu0 %vm201_vm3, %v176_v10  ;;  %v185_v13 = vld [vmem:[%s648_s26 + $0x58] sm:$0xff]  ;;  %v186_v15 = vld [vmem:[%s648_s26 + $0x60] sm:$0xff]  ;;  %v187_v17 = vld [vmem:[%s648_s26 + $0x68] sm:$0xff] }
  0x14   : > { %559 = vmatprep.mubr.msk.f32.mxu1 %vm201_vm3, %v184_v11  ;;  %v180_v18 = vld [vmem:[%s648_s26 + $0x30] sm:$0xff]  ;;  %v181_v20 = vld [vmem:[%s648_s26 + $0x38] sm:$0xff] }
  0x15   : > { %v188_v19 = vld [vmem:[%s648_s26 + $0x70] sm:$0xff]  ;;  %v189_v21 = vld [vmem:[%s648_s26 + $0x78] sm:$0xff] }
  0x16   : > { %548 = vmatmul.mubr.msk.f32.gmra.mrb[2].mxu0 %vm201_vm3, %v177_v12 }
  0x17   : > { %560 = vmatmul.mubr.msk.f32.gmra.mrb[2].mxu1 %vm201_vm3, %v185_v13  ;;  %550 = vmatprep.mubr.msk.f32.mxu0 %vm201_vm3, %v178_v14 }
  0x18   : > { %562 = vmatprep.mubr.msk.f32.mxu1 %vm201_vm3, %v186_v15 }
  0x1a   : > { %551 = vmatmul.mubr.msk.f32.gmra.mrb[4].mxu0 %vm201_vm3, %v179_v16 }
  0x1b   : > { %563 = vmatmul.mubr.msk.f32.gmra.mrb[4].mxu1 %vm201_vm3, %v187_v17  ;;  %553 = vmatprep.mubr.msk.f32.mxu0 %vm201_vm3, %v180_v18 }
  0x1c   : > { %565 = vmatprep.mubr.msk.f32.mxu1 %vm201_vm3, %v188_v19 }
  0x1e   : > { %554 = vmatmul.mubr.msk.f32.gmra.mrb[6].mxu0 %vm201_vm3, %v181_v20 }
  0x1f   : > { %566 = vmatmul.mubr.msk.f32.gmra.mrb[6].mxu1 %vm201_vm3, %v189_v21 }
  0xe5   : > { %v546_v23 = vpop.f32.mrb[0].mxu0 }
  0xe6   : > { %v558_v24 = vpop.f32.mrb[0].mxu1  ;;  %v326_v25 = vadd.f32 %v546_v23, %v496_v22  ;;  %v320_v27 = vpop.f32.mrb[1].mxu0 }
  0xe7   : > { %v366_v26 = vadd.f32 %v558_v24, %v496_v22  ;;  %v360_v28 = vpop.f32.mrb[1].mxu1  ;;  %v321_v29 = vadd.f32 %v496_v22, %v320_v27 }
  0xe8   : > { %v361_v30 = vadd.f32 %v496_v22, %v360_v28  ;;  %v400_v31 = vmax.f32 %v326_v25, 0.0 }
  0xe9   : > { %v408_v32 = vmax.f32 %v366_v26, 0.0  ;;  %v399_v33 = vmax.f32 %v321_v29, 0.0  ;;  %v549_v35 = vpop.f32.mrb[2].mxu0 }
  0xea   : > { %v407_v34 = vmax.f32 %v361_v30, 0.0  ;;  %v561_v36 = vpop.f32.mrb[2].mxu1  ;;  %416 = vst [vmem:[%s690_s4 + $0x8] sm:$0xff] %v400_v31  ;;  %v336_v37 = vadd.f32 %v549_v35, %v496_v22  ;;  %v330_v39 = vpop.f32.mrb[3].mxu0 }
  0xeb   : > { %424 = vst [vmem:[%s690_s4 + $0x48] sm:$0xff] %v408_v32  ;;  %v376_v38 = vadd.f32 %v561_v36, %v496_v22  ;;  %v370_v40 = vpop.f32.mrb[3].mxu1  ;;  %415 = vst [vmem:[%s690_s4] sm:$0xff] %v399_v33  ;;  %v331_v41 = vadd.f32 %v496_v22, %v330_v39 }
  0xec   : > { %423 = vst [vmem:[%s690_s4 + $0x40] sm:$0xff] %v407_v34  ;;  %v371_v42 = vadd.f32 %v496_v22, %v370_v40  ;;  %v402_v43 = vmax.f32 %v336_v37, 0.0 }
  0xed   : > { %v410_v44 = vmax.f32 %v376_v38, 0.0  ;;  %v401_v45 = vmax.f32 %v331_v41, 0.0  ;;  %v552_v47 = vpop.f32.mrb[4].mxu0 }
  0xee   : > { %v409_v46 = vmax.f32 %v371_v42, 0.0  ;;  %v564_v48 = vpop.f32.mrb[4].mxu1  ;;  %418 = vst [vmem:[%s690_s4 + $0x18] sm:$0xff] %v402_v43  ;;  %v346_v49 = vadd.f32 %v552_v47, %v496_v22  ;;  %v340_v51 = vpop.f32.mrb[5].mxu0 }
  0xef   : > { %426 = vst [vmem:[%s690_s4 + $0x58] sm:$0xff] %v410_v44  ;;  %v386_v50 = vadd.f32 %v564_v48, %v496_v22  ;;  %v380_v52 = vpop.f32.mrb[5].mxu1  ;;  %417 = vst [vmem:[%s690_s4 + $0x10] sm:$0xff] %v401_v45  ;;  %v341_v53 = vadd.f32 %v496_v22, %v340_v51 }
  0xf0   : > { %425 = vst [vmem:[%s690_s4 + $0x50] sm:$0xff] %v409_v46  ;;  %v381_v54 = vadd.f32 %v496_v22, %v380_v52  ;;  %v404_v55 = vmax.f32 %v346_v49, 0.0 }
  0xf1   : > { %v412_v56 = vmax.f32 %v386_v50, 0.0  ;;  %v403_v57 = vmax.f32 %v341_v53, 0.0  ;;  %v555_v59 = vpop.f32.mrb[6].mxu0 }
  0xf2   : > { %v411_v58 = vmax.f32 %v381_v54, 0.0  ;;  %v567_v60 = vpop.f32.mrb[6].mxu1  ;;  %420 = vst [vmem:[%s690_s4 + $0x28] sm:$0xff] %v404_v55  ;;  %v356_v61 = vadd.f32 %v555_v59, %v496_v22  ;;  %v350_v63 = vpop.f32.mrb[7].mxu0 }
  0xf3   : > { %428 = vst [vmem:[%s690_s4 + $0x68] sm:$0xff] %v412_v56  ;;  %v396_v62 = vadd.f32 %v567_v60, %v496_v22  ;;  %v390_v0 = vpop.f32.mrb[7].mxu1  ;;  %419 = vst [vmem:[%s690_s4 + $0x20] sm:$0xff] %v403_v57  ;;  %v351_v1 = vadd.f32 %v496_v22, %v350_v63 }
  0xf4   : > { %427 = vst [vmem:[%s690_s4 + $0x60] sm:$0xff] %v411_v58  ;;  %v391_v2 = vadd.f32 %v496_v22, %v390_v0  ;;  %v406_v3 = vmax.f32 %v356_v61, 0.0 }
  0xf5   : > { %v414_v4 = vmax.f32 %v396_v62, 0.0  ;;  %v405_v5 = vmax.f32 %v351_v1, 0.0 }
  0xf6   : > { %v413_v6 = vmax.f32 %v391_v2, 0.0  ;;  %422 = vst [vmem:[%s690_s4 + $0x38] sm:$0xff] %v406_v3 }
  0xf7   : > { %430 = vst [vmem:[%s690_s4 + $0x78] sm:$0xff] %v414_v4  ;;  %421 = vst [vmem:[%s690_s4 + $0x30] sm:$0xff] %v405_v5 }
  0xf8   : > { %429 = vst [vmem:[%s690_s4 + $0x70] sm:$0xff] %v413_v6 }
  0xf9 PF: > { %s13_s12 = sadd.s32 1, %s597_s12  }
  0xfa   : > { %p10_p4 = scmp.ge.s32.totalorder %s13_s12, 11  }
  0xfc   :  { %12 = sbr.rel (!%p10_p4) target bundleno = 1 (0x1), region = 62 }

// kernel: cnn_fashion_forward.4
= control target key start
LH: loop header
LB: loop body
LE: loop exit
PB: predicated region body
PF: predicated region fallthrough
CT: control target
= control target key end

     0   :  { %v373_v0 = vmov 0.0|0.0   ;;  %vm72_vm0 = vcmask 179200   ;;  %v374_v30 = vmov 0.0   ;;  %vm121_vm1 = vcmask 1045504   ;;  %s651_s1 = inlined_call_operand.vmem [shape: f32[150,128], index: 1, kind: input, shape index: {}]   ;;  %s652_s0 = inlined_call_operand.vmem [shape: f32[128,150], index: 0, kind: input, shape index: {}]   ;;  %s653_s2 = inlined_call_operand.vmem [shape: f32[1,128], index: 2, kind: input, shape index: {}]   ;;  %s654_s3 = inlined_call_operand.vmem [shape: f32[128,128], index: 3, kind: output, shape index: {}]  }
   0x1   :  { %324 = vmatprep.subr.bf16.mxu0 %v373_v0  ;;  %351 = vmatprep.subr.bf16.mxu1 %v373_v0  ;;  %v46_v1 = vld [vmem:[%s651_s1] sm:$0xff]  ;;  %v47_v2 = vld [vmem:[%s651_s1 + $0x8] sm:$0xff]  ;;  %v48_v3 = vld [vmem:[%s651_s1 + $0x10] sm:$0xff] }
   0x2   :  { %v325_v4 = vpack.c.bf16 %v47_v2, %v46_v1  ;;  %v49_v5 = vld [vmem:[%s651_s1 + $0x18] sm:$0xff]  ;;  %v50_v7 = vld [vmem:[%s651_s1 + $0x20] sm:$0xff]  ;;  %v51_v8 = vld [vmem:[%s651_s1 + $0x28] sm:$0xff] }
   0x3   :  { %v328_v6 = vpack.c.bf16 %v49_v5, %v48_v3  ;;  %v15_v9 = vld [vmem:[%s652_s0 + $0x8] sm:$0xff]  ;;  %v331_v11 = vpack.c.bf16 %v51_v8, %v50_v7  ;;  %v52_v12 = vld [vmem:[%s651_s1 + $0x30] sm:$0xff]  ;;  %v53_v13 = vld [vmem:[%s651_s1 + $0x38] sm:$0xff] }
   0x4   :  { %326 = vmatpush1.bf16.msra.mxu0 %v325_v4  ;;  %361 = vmatpush1.bf16.msra.mxu1 %v325_v4  ;;  %v31_v10 = vld [vmem:[%s652_s0 + $0x88] sm:$0xff]  ;;  %v334_v14 = vpack.c.bf16 %v53_v13, %v52_v12  ;;  %v54_v15 = vld [vmem:[%s651_s1 + $0x40] sm:$0xff]  ;;  %v56_v18 = vld [vmem:[%s651_s1 + $0x50] sm:$0xff] }
   0x5   :  { %327 = vmatprep.subr.bf16.mxu0 %v373_v0  ;;  %352 = vmatprep.subr.bf16.mxu1 %v373_v0  ;;  %v55_v16 = vld [vmem:[%s651_s1 + $0x48] sm:$0xff]  ;;  %v57_v19 = vld [vmem:[%s651_s1 + $0x58] sm:$0xff]  ;;  %v58_v21 = vld [vmem:[%s651_s1 + $0x60] sm:$0xff] }
   0x6   :  { %308 = vmatprep.mubr.msk.f32.mxu0 %vm72_vm0, %v15_v9  ;;  %316 = vmatprep.mubr.msk.f32.mxu1 %vm72_vm0, %v31_v10  ;;  %v337_v17 = vpack.c.bf16 %v55_v16, %v54_v15  ;;  %v340_v20 = vpack.c.bf16 %v57_v19, %v56_v18  ;;  %v59_v22 = vld [vmem:[%s651_s1 + $0x68] sm:$0xff]  ;;  %v60_v24 = vld [vmem:[%s651_s1 + $0x70] sm:$0xff]  ;;  %v61_v25 = vld [vmem:[%s651_s1 + $0x78] sm:$0xff] }
   0x7   :  { %v343_v23 = vpack.c.bf16 %v59_v22, %v58_v21  ;;  %v346_v26 = vpack.c.bf16 %v61_v25, %v60_v24  ;;  %v62_v27 = vld [vmem:[%s651_s1 + $0x80] sm:$0xff]  ;;  %v63_v28 = vld [vmem:[%s651_s1 + $0x88] sm:$0xff]  ;;  %v64_v31 = vld [vmem:[%s651_s1 + $0x90] sm:$0x3f] }
   0x8   :  { %329 = vmatpush1.bf16.msra.mxu0 %v328_v6  ;;  %362 = vmatpush1.bf16.msra.mxu1 %v328_v6  ;;  %v349_v29 = vpack.c.bf16 %v63_v28, %v62_v27  ;;  %v14_v32 = vld [vmem:[%s652_s0] sm:$0xff]  ;;  %v17_v34 = vld [vmem:[%s652_s0 + $0x18] sm:$0xff]  ;;  %v16_v36 = vld [vmem:[%s652_s0 + $0x10] sm:$0xff] }
   0x9   :  { %330 = vmatprep.subr.bf16.mxu0 %v373_v0  ;;  %353 = vmatprep.subr.bf16.mxu1 %v373_v0  ;;  %v30_v33 = vld [vmem:[%s652_s0 + $0x80] sm:$0xff]  ;;  %v33_v35 = vld [vmem:[%s652_s0 + $0x98] sm:$0xff]  ;;  %v32_v37 = vld [vmem:[%s652_s0 + $0x90] sm:$0xff] }
   0xa   :  { %v19_v38 = vld [vmem:[%s652_s0 + $0x28] sm:$0xff]  ;;  %v18_v40 = vld [vmem:[%s652_s0 + $0x20] sm:$0xff]  ;;  %v21_v42 = vld [vmem:[%s652_s0 + $0x38] sm:$0xff] }
   0xb   :  { %v35_v39 = vld [vmem:[%s652_s0 + $0xa8] sm:$0xff]  ;;  %v34_v41 = vld [vmem:[%s652_s0 + $0xa0] sm:$0xff]  ;;  %v37_v43 = vld [vmem:[%s652_s0 + $0xb8] sm:$0xff] }
   0xc   :  { %332 = vmatpush1.bf16.msra.mxu0 %v331_v11  ;;  %363 = vmatpush1.bf16.msra.mxu1 %v331_v11  ;;  %v20_v44 = vld [vmem:[%s652_s0 + $0x30] sm:$0xff]  ;;  %v23_v46 = vld [vmem:[%s652_s0 + $0x48] sm:$0xff]  ;;  %v22_v48 = vld [vmem:[%s652_s0 + $0x40] sm:$0xff] }
   0xd   :  { %333 = vmatprep.subr.bf16.mxu0 %v373_v0  ;;  %354 = vmatprep.subr.bf16.mxu1 %v373_v0  ;;  %v36_v45 = vld [vmem:[%s652_s0 + $0xb0] sm:$0xff]  ;;  %v39_v47 = vld [vmem:[%s652_s0 + $0xc8] sm:$0xff]  ;;  %v38_v49 = vld [vmem:[%s652_s0 + $0xc0] sm:$0xff] }
   0xe   :  { %v25_v50 = vld [vmem:[%s652_s0 + $0x58] sm:$0xff]  ;;  %v24_v52 = vld [vmem:[%s652_s0 + $0x50] sm:$0xff]  ;;  %v27_v54 = vld [vmem:[%s652_s0 + $0x68] sm:$0xff] }
   0xf   :  { %v41_v51 = vld [vmem:[%s652_s0 + $0xd8] sm:$0xff]  ;;  %v40_v53 = vld [vmem:[%s652_s0 + $0xd0] sm:$0xff]  ;;  %v43_v55 = vld [vmem:[%s652_s0 + $0xe8] sm:$0xff] }
  0x10   :  { %335 = vmatpush1.bf16.msra.mxu0 %v334_v14  ;;  %364 = vmatpush1.bf16.msra.mxu1 %v334_v14  ;;  %v26_v56 = vld [vmem:[%s652_s0 + $0x60] sm:$0xff]  ;;  %v29_v58 = vld [vmem:[%s652_s0 + $0x78] sm:$0xff]  ;;  %v28_v60 = vld [vmem:[%s652_s0 + $0x70] sm:$0xff] }
  0x11   :  { %336 = vmatprep.subr.bf16.mxu0 %v373_v0  ;;  %355 = vmatprep.subr.bf16.mxu1 %v373_v0  ;;  %v42_v57 = vld [vmem:[%s652_s0 + $0xe0] sm:$0xff]  ;;  %v45_v59 = vld [vmem:[%s652_s0 + $0xf8] sm:$0xff]  ;;  %v44_v61 = vld [vmem:[%s652_s0 + $0xf0] sm:$0xff] }
  0x12   :  { %v585_v62 = vld [vmem:[%s653_s2] ss:$0 sm:$0xff] }
  0x14   :  { %338 = vmatpush1.bf16.msra.mxu0 %v337_v17  ;;  %365 = vmatpush1.bf16.msra.mxu1 %v337_v17 }
  0x15   :  { %339 = vmatprep.subr.bf16.mxu0 %v373_v0  ;;  %356 = vmatprep.subr.bf16.mxu1 %v373_v0 }
  0x18   :  { %341 = vmatpush1.bf16.msra.mxu0 %v340_v20  ;;  %366 = vmatpush1.bf16.msra.mxu1 %v340_v20 }
  0x19   :  { %342 = vmatprep.subr.bf16.mxu0 %v373_v0  ;;  %357 = vmatprep.subr.bf16.mxu1 %v373_v0 }
  0x1c   :  { %344 = vmatpush1.bf16.msra.mxu0 %v343_v23  ;;  %367 = vmatpush1.bf16.msra.mxu1 %v343_v23 }
  0x1d   :  { %345 = vmatprep.subr.bf16.mxu0 %v373_v0  ;;  %358 = vmatprep.subr.bf16.mxu1 %v373_v0 }
  0x20   :  { %347 = vmatpush1.bf16.msra.mxu0 %v346_v26  ;;  %368 = vmatpush1.bf16.msra.mxu1 %v346_v26 }
  0x21   :  { %348 = vmatprep.subr.bf16.mxu0 %v373_v0  ;;  %359 = vmatprep.subr.bf16.mxu1 %v373_v0 }
  0x24   :  { %350 = vmatpush1.bf16.msra.mxu0 %v349_v29  ;;  %369 = vmatpush1.bf16.msra.mxu1 %v349_v29 }
  0x25   :  { %161 = vmatprep.subr.mxu0 %v374_v30  ;;  %360 = vmatprep.subr.mxu1 %v374_v30 }
  0x28   :  { %307 = vmatpush1.msk.msra.mxu0 %vm121_vm1, %v64_v31  ;;  %370 = vmatpush1.msk.msra.mxu1 %vm121_vm1, %v64_v31 }
  0x29   :  { %190 = vmatmul.mubr.f32.vlgmr.msra.gmra.mrb[0].mxu0 %v14_v32  ;;  %230 = vmatmul.mubr.f32.vlgmr.msra.gmra.mrb[0].mxu1 %v30_v33 }
  0x2a   :  { %309 = vmatprep.mubr.msk.f32.mxu0 %vm72_vm0, %v17_v34  ;;  %317 = vmatprep.mubr.msk.f32.mxu1 %vm72_vm0, %v33_v35 }
  0x2d   :  { %195 = vmatmul.mubr.f32.gmra.mrb[2].mxu0 %v16_v36  ;;  %235 = vmatmul.mubr.f32.gmra.mrb[2].mxu1 %v32_v37 }
  0x2e   :  { %310 = vmatprep.mubr.msk.f32.mxu0 %vm72_vm0, %v19_v38  ;;  %318 = vmatprep.mubr.msk.f32.mxu1 %vm72_vm0, %v35_v39 }
  0x31   :  { %200 = vmatmul.mubr.f32.gmra.mrb[4].mxu0 %v18_v40  ;;  %240 = vmatmul.mubr.f32.gmra.mrb[4].mxu1 %v34_v41 }
  0x32   :  { %311 = vmatprep.mubr.msk.f32.mxu0 %vm72_vm0, %v21_v42  ;;  %319 = vmatprep.mubr.msk.f32.mxu1 %vm72_vm0, %v37_v43 }
  0x35   :  { %205 = vmatmul.mubr.f32.gmra.mrb[6].mxu0 %v20_v44  ;;  %245 = vmatmul.mubr.f32.gmra.mrb[6].mxu1 %v36_v45 }
  0x36   :  { %312 = vmatprep.mubr.msk.f32.mxu0 %vm72_vm0, %v23_v46  ;;  %320 = vmatprep.mubr.msk.f32.mxu1 %vm72_vm0, %v39_v47 }
  0x39   :  { %210 = vmatmul.mubr.f32.gmra.mrb[8].mxu0 %v22_v48  ;;  %250 = vmatmul.mubr.f32.gmra.mrb[8].mxu1 %v38_v49 }
  0x3a   :  { %313 = vmatprep.mubr.msk.f32.mxu0 %vm72_vm0, %v25_v50  ;;  %321 = vmatprep.mubr.msk.f32.mxu1 %vm72_vm0, %v41_v51 }
  0x3d   :  { %215 = vmatmul.mubr.f32.gmra.mrb[10].mxu0 %v24_v52  ;;  %255 = vmatmul.mubr.f32.gmra.mrb[10].mxu1 %v40_v53 }
  0x3e   :  { %314 = vmatprep.mubr.msk.f32.mxu0 %vm72_vm0, %v27_v54  ;;  %322 = vmatprep.mubr.msk.f32.mxu1 %vm72_vm0, %v43_v55 }
  0x41   :  { %220 = vmatmul.mubr.f32.gmra.mrb[12].mxu0 %v26_v56  ;;  %260 = vmatmul.mubr.f32.gmra.mrb[12].mxu1 %v42_v57 }
  0x42   :  { %315 = vmatprep.mubr.msk.f32.mxu0 %vm72_vm0, %v29_v58  ;;  %323 = vmatprep.mubr.msk.f32.mxu1 %vm72_vm0, %v45_v59 }
  0x45   :  { %225 = vmatmul.mubr.f32.gmra.mrb[14].mxu0 %v28_v60  ;;  %265 = vmatmul.mubr.f32.gmra.mrb[14].mxu1 %v44_v61 }
  0xfc   :  { %v191_v63 = vpop.f32.mrb[0].mxu0  ;;  %v231_v0 = vpop.f32.mrb[0].mxu1 }
  0xfd   :  { %v192_v1 = vadd.f32 %v585_v62, %v191_v63  ;;  %v232_v2 = vadd.f32 %v585_v62, %v231_v0  ;;  %v193_v3 = vpop.f32.mrb[1].mxu0  ;;  %v233_v4 = vpop.f32.mrb[1].mxu1 }
  0xff   :  { %v270_v5 = vmax.f32 %v192_v1, 0.0  ;;  %v278_v6 = vmax.f32 %v232_v2, 0.0 }
 0x100   :  { %v196_v7 = vpop.f32.mrb[2].mxu0  ;;  %v236_v8 = vpop.f32.mrb[2].mxu1 }
 0x101   :  { %286 = vst [vmem:[%s654_s3] sm:$0xff] %v270_v5  ;;  %294 = vst [vmem:[%s654_s3 + $0x40] sm:$0xff] %v278_v6  ;;  %v197_v9 = vadd.f32 %v585_v62, %v196_v7  ;;  %v237_v10 = vadd.f32 %v585_v62, %v236_v8  ;;  %v198_v11 = vpop.f32.mrb[3].mxu0  ;;  %v238_v12 = vpop.f32.mrb[3].mxu1 }
 0x103   :  { %v271_v13 = vmax.f32 %v197_v9, 0.0  ;;  %v279_v14 = vmax.f32 %v237_v10, 0.0 }
 0x104   :  { %v201_v15 = vpop.f32.mrb[4].mxu0  ;;  %v241_v16 = vpop.f32.mrb[4].mxu1 }
 0x105   :  { %287 = vst [vmem:[%s654_s3 + $0x8] sm:$0xff] %v271_v13  ;;  %295 = vst [vmem:[%s654_s3 + $0x48] sm:$0xff] %v279_v14  ;;  %v202_v17 = vadd.f32 %v585_v62, %v201_v15  ;;  %v242_v18 = vadd.f32 %v585_v62, %v241_v16  ;;  %v203_v19 = vpop.f32.mrb[5].mxu0  ;;  %v243_v20 = vpop.f32.mrb[5].mxu1 }
 0x107   :  { %v272_v21 = vmax.f32 %v202_v17, 0.0  ;;  %v280_v22 = vmax.f32 %v242_v18, 0.0 }
 0x108   :  { %v206_v23 = vpop.f32.mrb[6].mxu0  ;;  %v246_v24 = vpop.f32.mrb[6].mxu1 }
 0x109   :  { %288 = vst [vmem:[%s654_s3 + $0x10] sm:$0xff] %v272_v21  ;;  %296 = vst [vmem:[%s654_s3 + $0x50] sm:$0xff] %v280_v22  ;;  %v207_v25 = vadd.f32 %v585_v62, %v206_v23  ;;  %v247_v26 = vadd.f32 %v585_v62, %v246_v24  ;;  %v208_v27 = vpop.f32.mrb[7].mxu0  ;;  %v248_v28 = vpop.f32.mrb[7].mxu1 }
 0x10b   :  { %v273_v29 = vmax.f32 %v207_v25, 0.0  ;;  %v281_v30 = vmax.f32 %v247_v26, 0.0 }
 0x10c   :  { %v211_v31 = vpop.f32.mrb[8].mxu0  ;;  %v251_v32 = vpop.f32.mrb[8].mxu1 }
 0x10d   :  { %289 = vst [vmem:[%s654_s3 + $0x18] sm:$0xff] %v273_v29  ;;  %297 = vst [vmem:[%s654_s3 + $0x58] sm:$0xff] %v281_v30  ;;  %v212_v33 = vadd.f32 %v585_v62, %v211_v31  ;;  %v252_v34 = vadd.f32 %v585_v62, %v251_v32  ;;  %v213_v35 = vpop.f32.mrb[9].mxu0  ;;  %v253_v36 = vpop.f32.mrb[9].mxu1 }
 0x10f   :  { %v274_v37 = vmax.f32 %v212_v33, 0.0  ;;  %v282_v38 = vmax.f32 %v252_v34, 0.0 }
 0x110   :  { %v216_v39 = vpop.f32.mrb[10].mxu0  ;;  %v256_v40 = vpop.f32.mrb[10].mxu1 }
 0x111   :  { %290 = vst [vmem:[%s654_s3 + $0x20] sm:$0xff] %v274_v37  ;;  %298 = vst [vmem:[%s654_s3 + $0x60] sm:$0xff] %v282_v38  ;;  %v217_v41 = vadd.f32 %v585_v62, %v216_v39  ;;  %v257_v42 = vadd.f32 %v585_v62, %v256_v40  ;;  %v218_v43 = vpop.f32.mrb[11].mxu0  ;;  %v258_v44 = vpop.f32.mrb[11].mxu1 }
 0x113   :  { %v275_v45 = vmax.f32 %v217_v41, 0.0  ;;  %v283_v46 = vmax.f32 %v257_v42, 0.0 }
 0x114   :  { %v221_v47 = vpop.f32.mrb[12].mxu0  ;;  %v261_v48 = vpop.f32.mrb[12].mxu1 }
 0x115   :  { %291 = vst [vmem:[%s654_s3 + $0x28] sm:$0xff] %v275_v45  ;;  %299 = vst [vmem:[%s654_s3 + $0x68] sm:$0xff] %v283_v46  ;;  %v222_v49 = vadd.f32 %v585_v62, %v221_v47  ;;  %v262_v50 = vadd.f32 %v585_v62, %v261_v48  ;;  %v223_v51 = vpop.f32.mrb[13].mxu0  ;;  %v263_v52 = vpop.f32.mrb[13].mxu1 }
 0x117   :  { %v276_v53 = vmax.f32 %v222_v49, 0.0  ;;  %v284_v54 = vmax.f32 %v262_v50, 0.0 }
 0x118   :  { %v226_v55 = vpop.f32.mrb[14].mxu0  ;;  %v266_v56 = vpop.f32.mrb[14].mxu1 }
 0x119   :  { %292 = vst [vmem:[%s654_s3 + $0x30] sm:$0xff] %v276_v53  ;;  %300 = vst [vmem:[%s654_s3 + $0x70] sm:$0xff] %v284_v54  ;;  %v227_v57 = vadd.f32 %v585_v62, %v226_v55  ;;  %v267_v58 = vadd.f32 %v585_v62, %v266_v56  ;;  %v228_v59 = vpop.f32.mrb[15].mxu0  ;;  %v268_v60 = vpop.f32.mrb[15].mxu1 }
 0x11b   :  { %v277_v61 = vmax.f32 %v227_v57, 0.0  ;;  %v285_v63 = vmax.f32 %v267_v58, 0.0 }
 0x11d   :  { %293 = vst [vmem:[%s654_s3 + $0x38] sm:$0xff] %v277_v61  ;;  %301 = vst [vmem:[%s654_s3 + $0x78] sm:$0xff] %v285_v63 }

// kernel: cnn_fashion_forward.5
= control target key start
LH: loop header
LB: loop body
LE: loop exit
PB: predicated region body
PF: predicated region fallthrough
CT: control target
= control target key end

     0   :  { %14 = vsyncpa [#allocation3], 0  ;;  %v626_v3 = vmov 0.0|0.0   ;;  %vm72_vm0 = vcmask 523264   ;;  %s915_s0 = inlined_call_operand.vmem [shape: f32[2,192], index: 0, kind: input, shape index: {}]   ;;  %s916_s1 = inlined_call_operand.vmem [shape: f32[192,128], index: 1, kind: input, shape index: {}]   ;;  %s917_s2 = inlined_call_operand.vmem [shape: f32[1,128], index: 2, kind: input, shape index: {}]   ;;  %s918_s3 = inlined_call_operand.vmem [shape: f32[128,128], index: 3, kind: input, shape index: {}]   ;;  %s919_s4 = inlined_call_operand.vmem [shape: f32[1,128], index: 4, kind: input, shape index: {}]   ;;  %s920_s5 = inlined_call_operand.vmem [shape: f32[128,128], index: 5, kind: input, shape index: {}]   ;;  %s921_s6 = inlined_call_operand.vmem [shape: f32[1,128], index: 6, kind: input, shape index: {}]   ;;  %s922_s7 = inlined_call_operand.hbm [shape: f32[2,128], index: 7, kind: output, shape index: {0}]   ;;  %s923_s8 = inlined_call_operand.hbm [shape: f32[2,128], index: 8, kind: output, shape index: {1}]  }
   0x1   :  { %v31_v0 = vld [vmem:[%s916_s1] sm:$0xff]  ;;  %v32_v1 = vld [vmem:[%s916_s1 + $0x8] sm:$0xff]  ;;  %v33_v2 = vld [vmem:[%s916_s1 + $0x10] sm:$0xff]  ;;  %485 = vmatprep.subr.bf16.mxu0 %v626_v3  ;;  %521 = vmatprep.subr.bf16.mxu1 %v626_v3 }
   0x2   :  { %v486_v4 = vpack.c.bf16 %v32_v1, %v31_v0  ;;  %v34_v5 = vld [vmem:[%s916_s1 + $0x18] sm:$0xff]  ;;  %v35_v7 = vld [vmem:[%s916_s1 + $0x20] sm:$0xff]  ;;  %v36_v8 = vld [vmem:[%s916_s1 + $0x28] sm:$0xff] }
   0x3   :  { %v489_v6 = vpack.c.bf16 %v34_v5, %v33_v2  ;;  %v492_v9 = vpack.c.bf16 %v36_v8, %v35_v7  ;;  %v37_v10 = vld [vmem:[%s916_s1 + $0x30] sm:$0xff]  ;;  %v38_v11 = vld [vmem:[%s916_s1 + $0x38] sm:$0xff]  ;;  %v707_v12 = vld.sshfl [vmem:[%s915_s0] sm:$0x33 pattern:$0x76325410] }
   0x4   :  { %487 = vmatpush1.bf16.msra.mxu0 %v486_v4  ;;  %v146_v13 = vld [vmem:[%s918_s3] sm:$0xff]  ;;  %v147_v14 = vld [vmem:[%s918_s3 + $0x8] sm:$0xff]  ;;  %v70_v15 = vcombine.high %v707_v12, %v707_v12  ;;  %v148_v17 = vld [vmem:[%s918_s3 + $0x10] sm:$0xff]  ;;  %v495_v19 = vpack.c.bf16 %v38_v11, %v37_v10 }
   0x5   :  { %488 = vmatprep.subr.bf16.mxu0 %v626_v3  ;;  %v522_v16 = vpack.c.bf16 %v147_v14, %v146_v13  ;;  %v149_v18 = vld [vmem:[%s918_s3 + $0x18] sm:$0xff]  ;;  %v39_v20 = vld [vmem:[%s916_s1 + $0x40] sm:$0xff]  ;;  %v40_v21 = vld [vmem:[%s916_s1 + $0x48] sm:$0xff] }
   0x6   :  { %378 = vmatprep.mubr.msk.f32.mxu0 %vm72_vm0, %v70_v15  ;;  %v525_v22 = vpack.c.bf16 %v149_v18, %v148_v17  ;;  %v150_v23 = vld [vmem:[%s918_s3 + $0x20] sm:$0xff]  ;;  %v151_v24 = vld [vmem:[%s918_s3 + $0x28] sm:$0xff] }
   0x7   :  { %523 = vmatpush3.bf16.msra.mxu1 %v522_v16 }
   0x8   :  { %490 = vmatpush1.bf16.msra.mxu0 %v489_v6  ;;  %524 = vmatprep.subr.bf16.mxu1 %v626_v3 }
   0x9   :  { %491 = vmatprep.subr.bf16.mxu0 %v626_v3 }
   0xc   :  { %493 = vmatpush1.bf16.msra.mxu0 %v492_v9 }
   0xd   :  { %494 = vmatprep.subr.bf16.mxu0 %v626_v3 }
   0xe   :  { %15 = vsyncpa [#allocation5], 0  ;;  %v498_v25 = vpack.c.bf16 %v40_v21, %v39_v20  ;;  %v41_v26 = vld [vmem:[%s916_s1 + $0x50] sm:$0xff]  ;;  %v42_v27 = vld [vmem:[%s916_s1 + $0x58] sm:$0xff]  ;;  %526 = vmatpush3.bf16.msra.mxu1 %v525_v22  ;;  %v528_v28 = vpack.c.bf16 %v151_v24, %v150_v23  ;;  %vm627_vm1 = vmmov 0   ;;  %v628_v63 = vmov 0.0  }
   0xf   :  { %527 = vmatprep.subr.bf16.mxu1 %v626_v3  ;;  %v152_v29 = vld [vmem:[%s918_s3 + $0x30] sm:$0xff]  ;;  %v153_v30 = vld [vmem:[%s918_s3 + $0x38] sm:$0xff]  ;;  %v501_v31 = vpack.c.bf16 %v42_v27, %v41_v26  ;;  %v43_v32 = vld [vmem:[%s916_s1 + $0x60] sm:$0xff]  ;;  %447 = vmatprep.mubr.msk.f32.mxu1 %vm627_vm1, %v628_v63  ;;  %vm334_vm2 = vcmask 1041408  }
  0x10   :  { %496 = vmatpush1.bf16.msra.mxu0 %v495_v19  ;;  %v44_v33 = vld [vmem:[%s916_s1 + $0x68] sm:$0xff]  ;;  %v531_v34 = vpack.c.bf16 %v153_v30, %v152_v29  ;;  %v154_v35 = vld [vmem:[%s918_s3 + $0x40] sm:$0xff]  ;;  %v45_v38 = vld [vmem:[%s916_s1 + $0x70] sm:$0xff] }
  0x11   :  { %497 = vmatprep.subr.bf16.mxu0 %v626_v3  ;;  %v155_v36 = vld [vmem:[%s918_s3 + $0x48] sm:$0xff]  ;;  %v504_v37 = vpack.c.bf16 %v44_v33, %v43_v32  ;;  %v46_v39 = vld [vmem:[%s916_s1 + $0x78] sm:$0xff]  ;;  %v156_v41 = vld [vmem:[%s918_s3 + $0x50] sm:$0xff] }
  0x12   :  { %529 = vmatpush3.bf16.msra.mxu1 %v528_v28  ;;  %v534_v40 = vpack.c.bf16 %v155_v36, %v154_v35  ;;  %v157_v42 = vld [vmem:[%s918_s3 + $0x58] sm:$0xff]  ;;  %v507_v43 = vpack.c.bf16 %v46_v39, %v45_v38  ;;  %v47_v44 = vld [vmem:[%s916_s1 + $0x80] sm:$0xff]  ;;  %v48_v45 = vld [vmem:[%s916_s1 + $0x88] sm:$0xff] }
  0x13   :  { %530 = vmatprep.subr.bf16.mxu1 %v626_v3  ;;  %v537_v46 = vpack.c.bf16 %v157_v42, %v156_v41  ;;  %v158_v47 = vld [vmem:[%s918_s3 + $0x60] sm:$0xff]  ;;  %v159_v48 = vld [vmem:[%s918_s3 + $0x68] sm:$0xff]  ;;  %v510_v49 = vpack.c.bf16 %v48_v45, %v47_v44  ;;  %v49_v50 = vld [vmem:[%s916_s1 + $0x90] sm:$0xff] }
  0x14   :  { %499 = vmatpush1.bf16.msra.mxu0 %v498_v25  ;;  %v50_v51 = vld [vmem:[%s916_s1 + $0x98] sm:$0xff]  ;;  %v540_v52 = vpack.c.bf16 %v159_v48, %v158_v47  ;;  %v51_v54 = vld [vmem:[%s916_s1 + $0xa0] sm:$0xff]  ;;  %v52_v55 = vld [vmem:[%s916_s1 + $0xa8] sm:$0xff] }
  0x15   :  { %500 = vmatprep.subr.bf16.mxu0 %v626_v3  ;;  %v513_v53 = vpack.c.bf16 %v50_v51, %v49_v50  ;;  %v516_v56 = vpack.c.bf16 %v52_v55, %v51_v54  ;;  %v53_v57 = vld [vmem:[%s916_s1 + $0xb0] sm:$0xff]  ;;  %v54_v58 = vld [vmem:[%s916_s1 + $0xb8] sm:$0xff]  ;;  %v376_v0 = vld [vmem:[%s917_s2] ss:$0 sm:$0xff] }
  0x16   :  { %532 = vmatpush3.bf16.msra.mxu1 %v531_v34  ;;  %v519_v59 = vpack.c.bf16 %v54_v58, %v53_v57  ;;  %v160_v60 = vld [vmem:[%s918_s3 + $0x70] sm:$0xff]  ;;  %v161_v61 = vld [vmem:[%s918_s3 + $0x78] sm:$0xff]  ;;  %v241_v1 = vld [vmem:[%s920_s5] sm:$0xff] }
  0x17   :  { %533 = vmatprep.subr.bf16.mxu1 %v626_v3  ;;  %v543_v62 = vpack.c.bf16 %v161_v61, %v160_v60  ;;  %v242_v2 = vld [vmem:[%s920_s5 + $0x8] sm:$0xff]  ;;  %v243_v9 = vld [vmem:[%s920_s5 + $0x10] sm:$0xff]  ;;  %v244_v10 = vld [vmem:[%s920_s5 + $0x18] sm:$0xff] }
  0x18   :  { %502 = vmatpush1.bf16.msra.mxu0 %v501_v31  ;;  %v546_v7 = vpack.c.bf16 %v242_v2, %v241_v1  ;;  %v549_v11 = vpack.c.bf16 %v244_v10, %v243_v9  ;;  %v246_v13 = vld [vmem:[%s920_s5 + $0x28] sm:$0xff]  ;;  %v247_v15 = vld [vmem:[%s920_s5 + $0x30] sm:$0xff]  ;;  %v248_v16 = vld [vmem:[%s920_s5 + $0x38] sm:$0xff] }
  0x19   :  { %503 = vmatprep.subr.bf16.mxu0 %v626_v3  ;;  %v555_v17 = vpack.c.bf16 %v248_v16, %v247_v15  ;;  %v249_v18 = vld [vmem:[%s920_s5 + $0x40] sm:$0xff]  ;;  %v250_v19 = vld [vmem:[%s920_s5 + $0x48] sm:$0xff]  ;;  %v251_v21 = vld [vmem:[%s920_s5 + $0x50] sm:$0xff] }
  0x1a   :  { %535 = vmatpush3.bf16.msra.mxu1 %v534_v40  ;;  %v558_v20 = vpack.c.bf16 %v250_v19, %v249_v18  ;;  %v252_v22 = vld [vmem:[%s920_s5 + $0x58] sm:$0xff]  ;;  %v253_v24 = vld [vmem:[%s920_s5 + $0x60] sm:$0xff]  ;;  %v254_v25 = vld [vmem:[%s920_s5 + $0x68] sm:$0xff] }
  0x1b   :  { %536 = vmatprep.subr.bf16.mxu1 %v626_v3  ;;  %v561_v23 = vpack.c.bf16 %v252_v22, %v251_v21  ;;  %v564_v26 = vpack.c.bf16 %v254_v25, %v253_v24  ;;  %v255_v27 = vld [vmem:[%s920_s5 + $0x70] sm:$0xff]  ;;  %v256_v28 = vld [vmem:[%s920_s5 + $0x78] sm:$0xff]  ;;  %v379_v30 = vld [vmem:[%s919_s4] ss:$0 sm:$0xff]  ;;  %s629_s4 = smov [#allocation2]  }
  0x1c   :  { %505 = vmatpush1.bf16.msra.mxu0 %v504_v37  ;;  %v567_v29 = vpack.c.bf16 %v256_v28, %v255_v27 }
  0x1d   :  { %506 = vmatprep.subr.bf16.mxu0 %v626_v3 }
  0x1e   :  { %538 = vmatpush3.bf16.msra.mxu1 %v537_v46 }
  0x1f   :  { %539 = vmatprep.subr.bf16.mxu1 %v626_v3 }
  0x20   :  { %508 = vmatpush1.bf16.msra.mxu0 %v507_v43 }
  0x21   :  { %509 = vmatprep.subr.bf16.mxu0 %v626_v3 }
  0x22   :  { %541 = vmatpush3.bf16.msra.mxu1 %v540_v52 }
  0x23   :  { %542 = vmatprep.subr.bf16.mxu1 %v626_v3 }
  0x24   :  { %511 = vmatpush1.bf16.msra.mxu0 %v510_v49 }
  0x25   :  { %512 = vmatprep.subr.bf16.mxu0 %v626_v3 }
  0x26   :  { %544 = vmatpush3.bf16.msra.mxu1 %v543_v62 }
  0x27   :  { %545 = vmatprep.subr.bf16.mxu1 %v626_v3 }
  0x28   :  { %514 = vmatpush1.bf16.msra.mxu0 %v513_v53 }
  0x29   :  { %515 = vmatprep.subr.bf16.mxu0 %v626_v3 }
  0x2c   :  { %517 = vmatpush1.bf16.msra.mxu0 %v516_v56 }
  0x2d   :  { %518 = vmatprep.subr.bf16.mxu0 %v626_v3 }
  0x30   :  { %520 = vmatpush1.bf16.msra.mxu0 %v519_v59 }
  0x33   :  { %140 = vmatmul.mubr.f32.vlgmr.msra.gmra.mrb[0].mxu0 %v707_v12  ;;  %v245_v12 = vld [vmem:[%s920_s5 + $0x20] sm:$0xff]  ;;  %s354_s5 = sshll.u32 %s629_s4, 4  ;;  %s355_s5 = int_to_ptr.vmem [resolvable:$true] %s354_s5 }
  0x34   :  { %v552_v14 = vpack.c.bf16 %v246_v13, %v245_v12  ;;  %s578_s27 = scalar_lea.vmem %s355_s5, 32  ;;  %p583_p1 = scmp.lt.s32.totalorder %s355_s5, %s355_s5 }
  0x35   :  { %p579_p0 = scmp.ne.s32.totalorder %s355_s5, %s578_s27  ;;  %p584_p2 = scmp.lt.s32.totalorder %s578_s27, %s578_s27 }
  0x37   :  { %p585_p3 = por %p584_p2, %p583_p1 }
  0x39   :  { %p586_p4 = pnand %p585_p3, %p579_p0 }
 0x106   :  { %v141_v4 = vpop.f32.mrb[0].mxu0 }
 0x107   :  { %v142_v5 = vadd.f32 %v376_v0, %v141_v4  ;;  %v143_v6 = vpop.f32.mrb[1].mxu0 }
 0x109   :  { %v145_v8 = vmax.f32 %v142_v5, 0.0 }
 0x10b   :  { %448 = vmatmul.mubr.f32.vlgmr.msra.gmra.mrb[0].mxu1 %v145_v8 }
 0x10c   :  { %547 = vmatpush3.bf16.msra.mxu1 %v546_v7  ;;  %482 = vmatprep.mubr.msk.f32.mxu1 %vm627_vm1, %v628_v63 }
 0x10d   :  { %548 = vmatprep.subr.bf16.mxu1 %v626_v3 }
 0x110   :  { %550 = vmatpush3.bf16.msra.mxu1 %v549_v11 }
 0x111   :  { %551 = vmatprep.subr.bf16.mxu1 %v626_v3 }
 0x114   :  { %553 = vmatpush3.bf16.msra.mxu1 %v552_v14 }
 0x115   :  { %554 = vmatprep.subr.bf16.mxu1 %v626_v3 }
 0x118   :  { %556 = vmatpush3.bf16.msra.mxu1 %v555_v17 }
 0x119   :  { %557 = vmatprep.subr.bf16.mxu1 %v626_v3 }
 0x11c   :  { %559 = vmatpush3.bf16.msra.mxu1 %v558_v20 }
 0x11d   :  { %560 = vmatprep.subr.bf16.mxu1 %v626_v3 }
 0x120   :  { %562 = vmatpush3.bf16.msra.mxu1 %v561_v23 }
 0x121   :  { %563 = vmatprep.subr.bf16.mxu1 %v626_v3 }
 0x124   :  { %565 = vmatpush3.bf16.msra.mxu1 %v564_v26 }
 0x125   :  { %566 = vmatprep.subr.bf16.mxu1 %v626_v3  ;;  %v380_v3 = vld [vmem:[%s921_s6] ss:$0 sm:$0xff] }
 0x128   :  { %568 = vmatpush3.bf16.msra.mxu1 %v567_v29 }
 0x1de   :  { %v235_v31 = vpop.f32.mrb[0].mxu1 }
 0x1df   :  { %v236_v32 = vadd.f32 %v379_v30, %v235_v31  ;;  %v449_v33 = vpop.f32.mrb[1].mxu1 }
 0x1e1   :  { %v239_v34 = vmax.f32 %v236_v32, 0.0 }
 0x1e3   :  { %240 = vst [vmem:[#allocation2] sm:$0x3] %v239_v34  ;;  %483 = vmatmul.mubr.f32.vlgmr.msra.gmra.mrb[2].mxu1 %v239_v34 }
 0x2b6   :  { %v330_v35 = vpop.f32.mrb[2].mxu1 }
 0x2b7   :  { %v331_v36 = vadd.f32 %v380_v3, %v330_v35  ;;  %v484_v37 = vpop.f32.mrb[3].mxu1 }
 0x2b9   :  { %v335_v38 = vsel %vm334_vm2, %v331_v36, -inf }
 0x2ba   :  { %336 = vmax.xlane.f32.xlu0 %v335_v38 }
 0x347   :  { %v337_v39 = vpop.xlane.xlu0 %336 }
 0x348   :  { %v338_v40 = vsub.f32 %v331_v36, %v337_v39 }
 0x34a   :  { %v339_v41 = vmul.f32 1.442695, %v338_v40 }
 0x34c   :  { %574 = vpow2.f32 %v339_v41 }
 0x356   :  { %v575_v42 = vpop.eup %574 }
 0x357   :  { %v341_v43 = vsel %vm334_vm2, %v575_v42, 0.0 }
 0x358   :  { %342 = vadd.xlane.f32.xlu0 %v341_v43 }
 0x359   :  { %589 = shalt.err (!%p586_p4)
}
 0x35a   :  { %s590_s29 = scalar_lea.hbm %s922_s7, 32 }
 0x35b   :  { %p591_p5 = scmp.ne.s32.totalorder %s922_s7, %s590_s29  ;;  %p594_p6 = scmp.lt.u32.totalorder %s590_s29, %s922_s7 }
 0x35d   :  { %p596_p7 = pnand %p594_p6, %p591_p5 }
 0x35f   :  { %599 = shalt.err (!%p596_p7)
}
 0x360   :  { %357 = dma.vmem_to_hbm [thread:$0]  %s355_s5, 32, %s922_s7, [#allocation3]  }
 0x361   :  { %s630_s13 = smov [#allocation4]  }
 0x362   :  { %s364_s14 = sshll.u32 %s630_s13, 4  ;;  %s365_s14 = int_to_ptr.vmem [resolvable:$true] %s364_s14 }
 0x363   :  { %s600_s15 = scalar_lea.vmem %s365_s14, 32  ;;  %p605_p9 = scmp.lt.s32.totalorder %s365_s14, %s365_s14 }
 0x364   :  { %p601_p8 = scmp.ne.s32.totalorder %s365_s14, %s600_s15  ;;  %p606_p10 = scmp.lt.s32.totalorder %s600_s15, %s600_s15 }
 0x366   :  { %p607_p11 = por %p606_p10, %p605_p9 }
 0x368   :  { %p608_p12 = pnand %p607_p11, %p601_p8 }
 0x3e5   :  { %v343_v44 = vpop.xlane.xlu0 %342 }
 0x3e6   :  { %576 = vlog2.f32 %v343_v44 }
 0x3f0   :  { %v577_v45 = vpop.eup %576 }
 0x3f1   :  { %v345_v46 = vmul.f32 0.6931472, %v577_v45 }
 0x3f3   :  { %v346_v47 = vsub.f32 %v338_v40, %v345_v46 }
 0x3f5   :  { %347 = vst [vmem:[#allocation4] sm:$0x3] %v346_v47 }
 0x3f6   :  { %611 = shalt.err (!%p608_p12)
}
 0x3f7   :  { %s612_s7 = scalar_lea.hbm %s923_s8, 32 }
 0x3f8   :  { %p613_p13 = scmp.ne.s32.totalorder %s923_s8, %s612_s7  ;;  %p616_p0 = scmp.lt.u32.totalorder %s612_s7, %s923_s8 }
 0x3fa   :  { %p618_p1 = pnand %p616_p0, %p613_p13 }
 0x3fc   :  { %621 = shalt.err (!%p618_p1)
}
 0x3fd   :  { %367 = dma.vmem_to_hbm [thread:$0]  %s365_s14, 32, %s923_s8, [#allocation5]  }
 0x3fe   :  { %622 = dma.done.wait [#allocation3], 32  }
 0x3ff   :  { %623 = vsyncadd [#allocation3], 4294967264 }
 0x400   :  { %624 = dma.done.wait [#allocation5], 32  }
 0x401   :  { %625 = vsyncadd [#allocation5], 4294967264 }
 0x402   :  { %374 = vsyncpa [#allocation3], 1 }
 0x403   :  { %375 = vsyncpa [#allocation5], 1 }

</bundles_post_ra>
